<compile_context>
chip_gen: v7x
topology: tpu7x:2x2x1
jax: 0.10.0
libtpu: 0.0.40
codegen_flags: <defaults>
</compile_context>

<pallas_src>
import math

import jax
import jax.numpy as jnp
from jax.experimental import pallas as pl
from jax.experimental.pallas import tpu as pltpu


def _linreg_kernel(b_ref, x_ref, w_ref, o_ref):
    # (TMr, cols*D) @ (cols*D, cols) -> (TMr, cols); f32 MXU accumulate.
    acc = jnp.dot(x_ref[...], w_ref[...], preferred_element_type=jnp.float32)
    # Bias: free SMEM scalar read -> VPU broadcast.
    o_ref[...] = (acc + b_ref[0]).astype(o_ref.dtype)


def _pack_cols(d):
    """Rows of X packed per Xp row (= output block width).

    cols*d is forced to a multiple of 128 so the packed X view is lane-dense;
    cols is widened up to 32 (wasted block-diagonal MXU flops scale with cols,
    and 32x stays well under the HBM-read budget even on v7x).
    """
    cols = 128 // math.gcd(d, 128)
    while cols < 32 and cols * 2 <= 128 and d * cols * 2 <= 4096:
        cols *= 2
    return cols


def _device_tuning():
    """Per-generation (target real-X-bytes per tile, vmem_limit_bytes)."""
    kind = ""
    try:
        kind = jax.devices()[0].device_kind.lower()
    except Exception:
        pass
    if "v5 lite" in kind or "v5e" in kind or "v5lite" in kind:
        return 2 << 20, 32 << 20   # ~0.8 TB/s HBM: ~2 MiB tiles already saturate
    if "v7" in kind:
        return 6 << 20, 44 << 20   # ~3.2 TB/s HBM but only 64 MiB physical VMEM
    if "v6" in kind or "v5p" in kind or "v4" in kind:
        return 4 << 20, 64 << 20   # 128 MiB VMEM, ~1.3 TB/s HBM
    return 4 << 20, 40 << 20       # unknown generation: conservative


def _sublane(dtype):
    # Sublane granule: 8 rows for 4-byte, 16 for 2-byte, 32 for 1-byte dtypes.
    return max(8, 32 // jnp.dtype(dtype).itemsize)


def linreg_forward(X, w, b, *, tile_bytes=None):
    """Pallas forward for LinearRegressScratch: returns (N, 1) = X @ w + b."""
    N, D = X.shape
    assert w.shape == (D, 1), w.shape

    cols = _pack_cols(D)
    K = cols * D
    itemsize = jnp.dtype(X.dtype).itemsize

    # Pad the batch to a multiple of `cols` (padded rows give y == b and are
    # sliced off below; no padding for typical power-of-two batch sizes).
    Np = pl.cdiv(N, cols) * cols
    Xsrc = X if Np == N else jnp.pad(X, ((0, Np - N), (0, 0)))
    NR = Np // cols
    Xp = Xsrc.reshape(NR, K)                       # bit-identical lane-dense view

    # Block-diagonal replicated weight: w_bd[i*D + d, j] = (i == j) * w[d].
    w_col = w.reshape(D).astype(jnp.float32)
    w_bd = (jnp.eye(cols, dtype=jnp.float32)[:, None, :]
            * w_col[None, :, None]).reshape(K, cols)

    b1 = jnp.asarray(b, dtype=jnp.float32).reshape(1)

    # ---- tile sizing: generation-aware + VMEM-budgeted ----------------------
    target_bytes, vmem_limit = _device_tuning()
    if tile_bytes is not None:
        target_bytes = int(tile_bytes)
    sub = _sublane(X.dtype)
    row_bytes = K * itemsize                       # lane-dense X: no padding
    # VMEM per Xp row: up to 3 X buffers + 2 lane-padded (->128) output buffers.
    per_row = 3 * row_bytes + 2 * 128 * 4
    vmem_cap = max(sub, int((vmem_limit * 3 // 4) // per_row) // sub * sub)

    if NR <= sub:
        tmr = NR                                   # tiny problem: one full block
    else:
        tmr = max(sub, int(target_bytes // row_bytes) // sub * sub)
        half = max(sub, (NR // 2) // sub * sub)    # >= 2 steps -> both v7x TCs busy
        tmr = min(tmr, half, vmem_cap)
    num_blocks = pl.cdiv(NR, tmr)

    def x_map(i, b_sref):
        return (i, 0)

    def w_map(i, b_sref):
        return (0, 0)

    def o_map(i, b_sref):
        return (i, 0)

    def run(x_spec):
        return pl.pallas_call(
            _linreg_kernel,
            out_shape=jax.ShapeDtypeStruct((NR, cols), X.dtype),
            grid_spec=pltpu.PrefetchScalarGridSpec(
                num_scalar_prefetch=1,             # bias -> SMEM, read as b_ref[0]
                grid=(num_blocks,),
                in_specs=[
                    x_spec,                        # streamed lane-dense X tiles
                    pl.BlockSpec((K, cols), w_map),  # block-diag weight, pinned
                ],
                out_specs=pl.BlockSpec((tmr, cols), o_map),
            ),
            compiler_params=pltpu.CompilerParams(
                dimension_semantics=("parallel",),  # independent row tiles
                vmem_limit_bytes=vmem_limit,
            ),
        )(b1, Xp, w_bd)

    out = None
    if num_blocks > 2 and hasattr(pl, "Buffered"):
        # Per-tile compute is ~0, so the pipeline is back-to-back DMA; a 3rd
        # buffer keeps two DMAs in flight and hides per-step issue gaps.
        try:
            out = run(pl.BlockSpec((tmr, K), x_map, pipeline_mode=pl.Buffered(3)))
        except Exception:
            out = None                             # fall back to default 2-deep
    if out is None:
        out = run(pl.BlockSpec((tmr, K), x_map))

    y = out.reshape(Np, 1)
    return y if Np == N else y[:N]


if __name__ == "__main__":
    sigma = 0.01
    key = jax.random.PRNGKey(0)
    kx, kw, kx2, kx3 = jax.random.split(key, 4)

    # Shapes implied by the module: X (batch, num_inputs), w (num_inputs, 1), b (1,)
    batch, num_inputs = 8, 32
    X = jax.random.normal(kx, (batch, num_inputs), dtype=jnp.float32)
    w = sigma * jax.random.normal(kw, (num_inputs, 1), dtype=jnp.float32)
    b = jnp.zeros((1,), dtype=jnp.float32)

    def ref(Xr, wr, br):
        return jnp.matmul(Xr, wr, precision=jax.lax.Precision.HIGHEST) + br

    # 1) Tiny case (single block, padded batch).
    y1 = linreg_forward(X, w, b)
    jax.block_until_ready(y1)
    assert y1.shape == (batch, 1)
    assert jnp.allclose(y1, ref(X, w, b), atol=1e-4, rtol=1e-4)

    # 2) Two-step parallel grid with nonzero bias.
    batch2 = 1024
    X2 = jax.random.normal(kx2, (batch2, num_inputs), dtype=jnp.float32)
    b2 = jnp.full((1,), 0.5, dtype=jnp.float32)
    y2 = linreg_forward(X2, w, b2)
    jax.block_until_ready(y2)
    assert y2.shape == (batch2, 1)
    assert jnp.allclose(y2, ref(X2, w, b2), atol=1e-4, rtol=1e-4)

    # 3) Longer pipelined grid (3-deep X buffering), ragged batch (row padding
    #    + partial last block), forced small tiles so every backend runs >2 steps.
    batch3 = 50003
    X3 = jax.random.normal(kx3, (batch3, num_inputs), dtype=jnp.float32)
    y3 = linreg_forward(X3, w, b2, tile_bytes=1 << 20)
    jax.block_until_ready(y3)
    assert y3.shape == (batch3, 1)
    assert jnp.allclose(y3, ref(X3, w, b2), atol=1e-4, rtol=1e-4)

    print("KERNEL_OK")
</pallas_src>

<mosaic_0001>
module attributes {stable_mosaic.version = 11 : i64} {
  func.func @_linreg_kernel(%arg0: i32, %arg1: memref<1xf32, #tpu.memory_space<smem>>, %arg2: memref<1x1024xf32, #tpu.memory_space<vmem>>, %arg3: memref<1024x32xf32, #tpu.memory_space<vmem>>, %arg4: memref<1x32xf32, #tpu.memory_space<vmem>>) attributes {dimension_semantics = [#tpu.dimension_semantics<parallel>], iteration_bounds = array<i64: 1>, scalar_prefetch = 1 : i64, scratch_operands = 0 : i64, tpu.core_type = #tpu.core_type<tc>, window_params = [{transform_indices = @transform_0, window_bounds = array<i64: 1, 1024>}, {pipeline_mode = #tpu.pipeline_mode<synchronous>, transform_indices = @transform_1, window_bounds = array<i64: 1024, 32>}, {transform_indices = @transform_2, window_bounds = array<i64: 1, 32>}]} {
    %c0 = arith.constant 0 : index
    %c0_0 = arith.constant 0 : index
    %0 = vector.load %arg2[%c0, %c0_0] : memref<1x1024xf32, #tpu.memory_space<vmem>>, vector<1x1024xf32>
    %c0_1 = arith.constant 0 : index
    %c0_2 = arith.constant 0 : index
    %1 = vector.load %arg3[%c0_1, %c0_2] : memref<1024x32xf32, #tpu.memory_space<vmem>>, vector<1024x32xf32>
    %cst = arith.constant dense<0.000000e+00> : vector<1x32xf32>
    %2 = tpu.matmul %0, %1, %cst {dimension_numbers = #tpu.dot_dimension_numbers<[1], [0], [0], [1], [0, 0, 1, 1], [], []>} : vector<1x1024xf32>, vector<1024x32xf32>, vector<1x32xf32> -> vector<1x32xf32>
    %c0_3 = arith.constant 0 : index
    %3 = memref.load %arg1[%c0_3] : memref<1xf32, #tpu.memory_space<smem>>
    %4 = vector.broadcast %3 : f32 to vector<1x32xf32>
    %5 = arith.addf %2, %4 : vector<1x32xf32>
    %c0_4 = arith.constant 0 : index
    %c0_5 = arith.constant 0 : index
    %6 = vector.load %arg4[%c0_4, %c0_5] : memref<1x32xf32, #tpu.memory_space<vmem>>, vector<1x32xf32>
    tpu.vector_store %arg4[%c0_4, %c0_5], %5 {strides = array<i32>} : memref<1x32xf32, #tpu.memory_space<vmem>>, vector<1x32xf32>,
    return
  }
  func.func @transform_0(%arg0: i32, %arg1: memref<1xf32, #tpu.memory_space<smem>>) -> (i32, i32) {
    %c0_i32 = arith.constant 0 : i32
    %c0_i32_0 = arith.constant 0 : i32
    return %arg0, %c0_i32 : i32, i32
  }
  func.func @transform_1(%arg0: i32, %arg1: memref<1xf32, #tpu.memory_space<smem>>) -> (i32, i32) {
    %c0_i32 = arith.constant 0 : i32
    %c0_i32_0 = arith.constant 0 : i32
    %c0_i32_1 = arith.constant 0 : i32
    return %c0_i32, %c0_i32_0 : i32, i32
  }
  func.func @transform_2(%arg0: i32, %arg1: memref<1xf32, #tpu.memory_space<smem>>) -> (i32, i32) {
    %c0_i32 = arith.constant 0 : i32
    %c0_i32_0 = arith.constant 0 : i32
    return %arg0, %c0_i32 : i32, i32
  }
}

</mosaic_0001>

<bundles_post_ra>
// kernel: tpu_custom_call.1
= control target key start
LH: loop header
LB: loop body
LE: loop exit
PB: predicated region body
PF: predicated region fallthrough
CT: control target
= control target key end

     0   :  { %v146_v47 = vlaneseq  ;;  %s1218_s0 = inlined_call_operand.<no memory space> [shape: f32[1], index: 0, kind: input, shape index: {}]   ;;  %s1219_s1 = inlined_call_operand.vmem [shape: f32[1,1024], index: 1, kind: input, shape index: {}]   ;;  %s1220_s2 = inlined_call_operand.vmem [shape: f32[1024,32], index: 2, kind: input, shape index: {}]   ;;  %s1221_s3 = inlined_call_operand.hbm [shape: f32[1,32], index: 3, kind: output, shape index: {}]  }
   0x1   :  { %v31_v0 = vld [vmem:[%s1220_s2 + $0x80] sm:$0xff]  ;;  %v32_v1 = vld [vmem:[%s1220_s2 + $0x88] sm:$0xff]  ;;  %v33_v11 = vld [vmem:[%s1220_s2 + $0x90] sm:$0xff] }
   0x2   :  { %v15_v2 = vld [vmem:[%s1220_s2] sm:$0xff]  ;;  %v622_v3 = vpack.c.bf16 %v32_v1, %v31_v0  ;;  %v16_v4 = vld [vmem:[%s1220_s2 + $0x8] sm:$0xff]  ;;  %v34_v13 = vld [vmem:[%s1220_s2 + $0x98] sm:$0xff]  ;;  %v922_v61 = vshrl.u32 %v146_v47, 7 }
   0x3   :  { %v63_v5 = vld [vmem:[%s1220_s2 + $0x180] sm:$0xff]  ;;  %v64_v6 = vld [vmem:[%s1220_s2 + $0x188] sm:$0xff]  ;;  %v624_v7 = vpack.c.bf16 %v16_v4, %v15_v2  ;;  %v17_v14 = vld [vmem:[%s1220_s2 + $0x10] sm:$0xff]  ;;  %v626_v16 = vpack.c.bf16 %v34_v13, %v33_v11 }
   0x4   :  { %v654_v8 = vpack.c.bf16 %v64_v6, %v63_v5  ;;  %v47_v9 = vld [vmem:[%s1220_s2 + $0x100] sm:$0xff]  ;;  %v48_v10 = vld [vmem:[%s1220_s2 + $0x108] sm:$0xff]  ;;  %623 = vmatprep.subr.bf16.mxu0 %v622_v3  ;;  %v18_v15 = vld [vmem:[%s1220_s2 + $0x18] sm:$0xff]  ;;  %v160_v11 = vsub.s32 3, %v922_v61 }
   0x5   :  { %v656_v12 = vpack.c.bf16 %v48_v10, %v47_v9  ;;  %625 = vmatpush3.bf16.msra.mxu0 %v624_v7  ;;  %v628_v17 = vpack.c.bf16 %v18_v15, %v17_v14  ;;  %v65_v18 = vld [vmem:[%s1220_s2 + $0x190] sm:$0xff]  ;;  %v66_v19 = vld [vmem:[%s1220_s2 + $0x198] sm:$0xff]  ;;  %v35_v23 = vld [vmem:[%s1220_s2 + $0xa0] sm:$0xff]  ;;  %v152_v10 = vsub.s32 1, %v922_v61 }
   0x6   :  { %655 = vmatprep.subr.bf16.mxu1 %v654_v8  ;;  %v49_v20 = vld [vmem:[%s1220_s2 + $0x110] sm:$0xff]  ;;  %v658_v21 = vpack.c.bf16 %v66_v19, %v65_v18  ;;  %v50_v22 = vld [vmem:[%s1220_s2 + $0x118] sm:$0xff]  ;;  %v36_v24 = vld [vmem:[%s1220_s2 + $0xa8] sm:$0xff]  ;;  %627 = vmatprep.subr.bf16.mxu0 %v626_v16 }
   0x7   :  { %657 = vmatpush3.bf16.msra.mxu1 %v656_v12  ;;  %v660_v25 = vpack.c.bf16 %v50_v22, %v49_v20  ;;  %v630_v26 = vpack.c.bf16 %v36_v24, %v35_v23  ;;  %v19_v27 = vld [vmem:[%s1220_s2 + $0x20] sm:$0xff]  ;;  %v20_v28 = vld [vmem:[%s1220_s2 + $0x28] sm:$0xff]  ;;  %v37_v35 = vld [vmem:[%s1220_s2 + $0xb0] sm:$0xff] }
   0x8   :  { %v67_v29 = vld [vmem:[%s1220_s2 + $0x1a0] sm:$0xff]  ;;  %659 = vmatprep.subr.bf16.mxu1 %v658_v21  ;;  %v68_v30 = vld [vmem:[%s1220_s2 + $0x1a8] sm:$0xff]  ;;  %v632_v33 = vpack.c.bf16 %v20_v28, %v19_v27  ;;  %v38_v36 = vld [vmem:[%s1220_s2 + $0xb8] sm:$0xff] }
   0x9   :  { %v51_v31 = vld [vmem:[%s1220_s2 + $0x120] sm:$0xff]  ;;  %v52_v32 = vld [vmem:[%s1220_s2 + $0x128] sm:$0xff]  ;;  %629 = vmatpush3.bf16.msra.mxu0 %v628_v17  ;;  %v662_v34 = vpack.c.bf16 %v68_v30, %v67_v29  ;;  %v21_v37 = vld [vmem:[%s1220_s2 + $0x30] sm:$0xff]  ;;  %v634_v39 = vpack.c.bf16 %v38_v36, %v37_v35 }
   0xa   :  { %631 = vmatprep.subr.bf16.mxu0 %v630_v26  ;;  %v664_v38 = vpack.c.bf16 %v52_v32, %v51_v31  ;;  %v22_v40 = vld [vmem:[%s1220_s2 + $0x38] sm:$0xff]  ;;  %v69_v41 = vld [vmem:[%s1220_s2 + $0x1b0] sm:$0xff]  ;;  %v39_v46 = vld [vmem:[%s1220_s2 + $0xc0] sm:$0xff] }
   0xb   :  { %661 = vmatpush3.bf16.msra.mxu1 %v660_v25  ;;  %v70_v42 = vld [vmem:[%s1220_s2 + $0x1b8] sm:$0xff]  ;;  %v53_v44 = vld [vmem:[%s1220_s2 + $0x130] sm:$0xff]  ;;  %v40_v48 = vld [vmem:[%s1220_s2 + $0xc8] sm:$0xff]  ;;  %v636_v49 = vpack.c.bf16 %v22_v40, %v21_v37 }
   0xc   :  { %663 = vmatprep.subr.bf16.mxu1 %v662_v34  ;;  %v666_v43 = vpack.c.bf16 %v70_v42, %v69_v41  ;;  %v54_v45 = vld [vmem:[%s1220_s2 + $0x138] sm:$0xff]  ;;  %v71_v50 = vld [vmem:[%s1220_s2 + $0x1c0] sm:$0xff]  ;;  %v72_v51 = vld [vmem:[%s1220_s2 + $0x1c8] sm:$0xff]  ;;  %v638_v53 = vpack.c.bf16 %v40_v48, %v39_v46 }
   0xd   :  { %633 = vmatpush3.bf16.msra.mxu0 %v632_v33  ;;  %v668_v52 = vpack.c.bf16 %v54_v45, %v53_v44  ;;  %v23_v54 = vld [vmem:[%s1220_s2 + $0x40] sm:$0xff]  ;;  %v24_v55 = vld [vmem:[%s1220_s2 + $0x48] sm:$0xff]  ;;  %v670_v57 = vpack.c.bf16 %v72_v51, %v71_v50  ;;  %v41_v59 = vld [vmem:[%s1220_s2 + $0xd0] sm:$0xff] }
   0xe   :  { %635 = vmatprep.subr.bf16.mxu0 %v634_v39  ;;  %v55_v56 = vld [vmem:[%s1220_s2 + $0x140] sm:$0xff]  ;;  %v56_v58 = vld [vmem:[%s1220_s2 + $0x148] sm:$0xff]  ;;  %v42_v60 = vld [vmem:[%s1220_s2 + $0xd8] sm:$0xff]  ;;  %v640_v0 = vpack.c.bf16 %v24_v55, %v23_v54  ;;  %v148_v39 = vsub.s32 0, %v922_v61 }
   0xf   :  { %665 = vmatpush3.bf16.msra.mxu1 %v664_v38  ;;  %v73_v62 = vld [vmem:[%s1220_s2 + $0x1d0] sm:$0xff]  ;;  %v74_v63 = vld [vmem:[%s1220_s2 + $0x1d8] sm:$0xff]  ;;  %v672_v1 = vpack.c.bf16 %v56_v58, %v55_v56  ;;  %v642_v2 = vpack.c.bf16 %v42_v60, %v41_v59  ;;  %v43_v8 = vld [vmem:[%s1220_s2 + $0xe0] sm:$0xff] }
  0x10   :  { %667 = vmatprep.subr.bf16.mxu1 %v666_v43  ;;  %v25_v3 = vld [vmem:[%s1220_s2 + $0x50] sm:$0xff]  ;;  %v26_v4 = vld [vmem:[%s1220_s2 + $0x58] sm:$0xff]  ;;  %v674_v6 = vpack.c.bf16 %v74_v63, %v73_v62  ;;  %v44_v9 = vld [vmem:[%s1220_s2 + $0xe8] sm:$0xff]  ;;  %v156_v43 = vsub.s32 2, %v922_v61 }
  0x11   :  { %637 = vmatpush3.bf16.msra.mxu0 %v636_v49  ;;  %v57_v5 = vld [vmem:[%s1220_s2 + $0x150] sm:$0xff]  ;;  %v58_v7 = vld [vmem:[%s1220_s2 + $0x158] sm:$0xff]  ;;  %v75_v12 = vld [vmem:[%s1220_s2 + $0x1e0] sm:$0xff]  ;;  %v644_v14 = vpack.c.bf16 %v26_v4, %v25_v3  ;;  %v646_v17 = vpack.c.bf16 %v44_v9, %v43_v8 }
  0x12   :  { %639 = vmatprep.subr.bf16.mxu0 %v638_v53  ;;  %v76_v13 = vld [vmem:[%s1220_s2 + $0x1e8] sm:$0xff]  ;;  %v27_v15 = vld [vmem:[%s1220_s2 + $0x60] sm:$0xff]  ;;  %v676_v16 = vpack.c.bf16 %v58_v7, %v57_v5  ;;  %v45_v23 = vld [vmem:[%s1220_s2 + $0xf0] sm:$0xff]  ;;  %v168_v53 = vsub.s32 5, %v922_v61 }
  0x13   :  { %669 = vmatpush3.bf16.msra.mxu1 %v668_v52  ;;  %v28_v18 = vld [vmem:[%s1220_s2 + $0x68] sm:$0xff]  ;;  %v59_v19 = vld [vmem:[%s1220_s2 + $0x160] sm:$0xff]  ;;  %v678_v21 = vpack.c.bf16 %v76_v13, %v75_v12  ;;  %v46_v24 = vld [vmem:[%s1220_s2 + $0xf8] sm:$0xff] }
  0x14   :  { %671 = vmatprep.subr.bf16.mxu1 %v670_v57  ;;  %v968_v20 = vld [vmem:[%s1219_s1] sm:$0xff]  ;;  %v60_v22 = vld [vmem:[%s1220_s2 + $0x168] sm:$0xff]  ;;  %v77_v27 = vld [vmem:[%s1220_s2 + $0x1f0] sm:$0xff]  ;;  %v648_v29 = vpack.c.bf16 %v28_v18, %v27_v15  ;;  %v650_v31 = vpack.c.bf16 %v46_v24, %v45_v23  ;;  %v176_v57 = vsub.s32 7, %v922_v61 }
  0x15   :  { %641 = vmatpush3.bf16.msra.mxu0 %v640_v0  ;;  %v153_v25 = vrot.slane %v968_v20, %v152_v10  ;;  %v161_v26 = vrot.slane %v968_v20, %v160_v11  ;;  %v78_v28 = vld [vmem:[%s1220_s2 + $0x1f8] sm:$0xff]  ;;  %v680_v30 = vpack.c.bf16 %v60_v22, %v59_v19  ;;  %v29_v32 = vld [vmem:[%s1220_s2 + $0x70] sm:$0xff]  ;;  %v95_v37 = vld [vmem:[%s1220_s2 + $0x280] sm:$0xff]  ;;  %v149_v54 = vrot.slane %v968_v20, %v148_v39 }
  0x16   :  { %643 = vmatprep.subr.bf16.mxu0 %v642_v2  ;;  %v30_v33 = vld [vmem:[%s1220_s2 + $0x78] sm:$0xff]  ;;  %v61_v34 = vld [vmem:[%s1220_s2 + $0x170] sm:$0xff]  ;;  %v682_v35 = vpack.c.bf16 %v78_v28, %v77_v27  ;;  %v96_v38 = vld [vmem:[%s1220_s2 + $0x288] sm:$0xff]  ;;  %v157_v59 = vrot.slane %v968_v20, %v156_v43  ;;  %v177_v9 = vrot.slane %v968_v20, %v176_v57 }
  0x17   :  { %673 = vmatpush3.bf16.msra.mxu1 %v672_v1  ;;  %250 = vmatprep.mubr.f32.mxu0 %v153_v25  ;;  %v62_v36 = vld [vmem:[%s1220_s2 + $0x178] sm:$0xff]  ;;  %v127_v40 = vld [vmem:[%s1220_s2 + $0x380] sm:$0xff]  ;;  %v128_v41 = vld [vmem:[%s1220_s2 + $0x388] sm:$0xff]  ;;  %v652_v42 = vpack.c.bf16 %v30_v33, %v29_v32  ;;  %v686_v45 = vpack.c.bf16 %v96_v38, %v95_v37 }
  0x18   :  { %675 = vmatprep.subr.bf16.mxu1 %v674_v6  ;;  %320 = vmatprep.mubr.f32.mxu1 %v161_v26  ;;  %v684_v44 = vpack.c.bf16 %v62_v36, %v61_v34  ;;  %v79_v46 = vld [vmem:[%s1220_s2 + $0x200] sm:$0xff]  ;;  %v80_v47 = vld [vmem:[%s1220_s2 + $0x208] sm:$0xff]  ;;  %v718_v49 = vpack.c.bf16 %v128_v41, %v127_v40  ;;  %v97_v51 = vld [vmem:[%s1220_s2 + $0x290] sm:$0xff]  ;;  %v169_v6 = vrot.slane %v968_v20, %v168_v53 }
  0x19   :  { %645 = vmatpush3.bf16.msra.mxu0 %v644_v14  ;;  %v111_v48 = vld [vmem:[%s1220_s2 + $0x300] sm:$0xff]  ;;  %v112_v50 = vld [vmem:[%s1220_s2 + $0x308] sm:$0xff]  ;;  %v98_v52 = vld [vmem:[%s1220_s2 + $0x298] sm:$0xff]  ;;  %v688_v58 = vpack.c.bf16 %v80_v47, %v79_v46 }
  0x1a   :  { %647 = vmatprep.subr.bf16.mxu0 %v646_v17  ;;  %v129_v55 = vld [vmem:[%s1220_s2 + $0x390] sm:$0xff]  ;;  %v130_v56 = vld [vmem:[%s1220_s2 + $0x398] sm:$0xff]  ;;  %v720_v60 = vpack.c.bf16 %v112_v50, %v111_v48  ;;  %v690_v62 = vpack.c.bf16 %v98_v52, %v97_v51  ;;  %v99_v4 = vld [vmem:[%s1220_s2 + $0x2a0] sm:$0xff] }
  0x1b   :  { %677 = vmatpush3.bf16.msra.mxu1 %v676_v16  ;;  %v81_v63 = vld [vmem:[%s1220_s2 + $0x210] sm:$0xff]  ;;  %v82_v0 = vld [vmem:[%s1220_s2 + $0x218] sm:$0xff]  ;;  %v722_v2 = vpack.c.bf16 %v130_v56, %v129_v55  ;;  %v100_v5 = vld [vmem:[%s1220_s2 + $0x2a8] sm:$0xff] }
  0x1c   :  { %679 = vmatprep.subr.bf16.mxu1 %v678_v21  ;;  %v113_v1 = vld [vmem:[%s1220_s2 + $0x310] sm:$0xff]  ;;  %v114_v3 = vld [vmem:[%s1220_s2 + $0x318] sm:$0xff]  ;;  %v131_v7 = vld [vmem:[%s1220_s2 + $0x3a0] sm:$0xff]  ;;  %v692_v10 = vpack.c.bf16 %v82_v0, %v81_v63  ;;  %v694_v12 = vpack.c.bf16 %v100_v5, %v99_v4 }
  0x1d   :  { %649 = vmatpush3.bf16.msra.mxu0 %v648_v29  ;;  %v132_v8 = vld [vmem:[%s1220_s2 + $0x3a8] sm:$0xff]  ;;  %v724_v11 = vpack.c.bf16 %v114_v3, %v113_v1  ;;  %v83_v13 = vld [vmem:[%s1220_s2 + $0x220] sm:$0xff]  ;;  %v101_v18 = vld [vmem:[%s1220_s2 + $0x2b0] sm:$0xff] }
  0x1e   :  { %651 = vmatprep.subr.bf16.mxu0 %v650_v31  ;;  %v84_v14 = vld [vmem:[%s1220_s2 + $0x228] sm:$0xff]  ;;  %v115_v15 = vld [vmem:[%s1220_s2 + $0x320] sm:$0xff]  ;;  %v726_v16 = vpack.c.bf16 %v132_v8, %v131_v7  ;;  %v102_v19 = vld [vmem:[%s1220_s2 + $0x2b8] sm:$0xff] }
  0x1f   :  { %681 = vmatpush3.bf16.msra.mxu1 %v680_v30  ;;  %v116_v17 = vld [vmem:[%s1220_s2 + $0x328] sm:$0xff]  ;;  %v133_v21 = vld [vmem:[%s1220_s2 + $0x3b0] sm:$0xff]  ;;  %v134_v22 = vld [vmem:[%s1220_s2 + $0x3b8] sm:$0xff]  ;;  %v696_v23 = vpack.c.bf16 %v84_v14, %v83_v13  ;;  %v698_v25 = vpack.c.bf16 %v102_v19, %v101_v18 }
  0x20   :  { %683 = vmatprep.subr.bf16.mxu1 %v682_v35  ;;  %v728_v24 = vpack.c.bf16 %v116_v17, %v115_v15  ;;  %v85_v26 = vld [vmem:[%s1220_s2 + $0x230] sm:$0xff]  ;;  %v86_v27 = vld [vmem:[%s1220_s2 + $0x238] sm:$0xff]  ;;  %v730_v29 = vpack.c.bf16 %v134_v22, %v133_v21  ;;  %v103_v31 = vld [vmem:[%s1220_s2 + $0x2c0] sm:$0xff] }
  0x21   :  { %653 = vmatpush3.bf16.msra.mxu0 %v652_v42  ;;  %v117_v28 = vld [vmem:[%s1220_s2 + $0x330] sm:$0xff]  ;;  %v118_v30 = vld [vmem:[%s1220_s2 + $0x338] sm:$0xff]  ;;  %v104_v32 = vld [vmem:[%s1220_s2 + $0x2c8] sm:$0xff] }
  0x22   :  { %687 = vmatprep.subr.bf16.mxu0 %v686_v45  ;;  %v135_v33 = vld [vmem:[%s1220_s2 + $0x3c0] sm:$0xff]  ;;  %v136_v34 = vld [vmem:[%s1220_s2 + $0x3c8] sm:$0xff] }
  0x23   :  { %685 = vmatpush3.bf16.msra.mxu1 %v684_v44 }
  0x24   :  { %719 = vmatprep.subr.bf16.mxu1 %v718_v49  ;;  %251 = vmatmul.mubr.f32.vlgmr.msra.gmra.mrb[0].mxu0 %v149_v54 }
  0x25   :  { %689 = vmatpush3.bf16.msra.mxu0 %v688_v58  ;;  %390 = vmatprep.mubr.f32.mxu0 %v169_v6 }
  0x26   :  { %321 = vmatmul.mubr.f32.vlgmr.msra.gmra.mrb[0].mxu1 %v157_v59  ;;  %691 = vmatprep.subr.bf16.mxu0 %v690_v62 }
  0x27   :  { %721 = vmatpush3.bf16.msra.mxu1 %v720_v60  ;;  %460 = vmatprep.mubr.f32.mxu1 %v177_v9 }
  0x28   :  { %723 = vmatprep.subr.bf16.mxu1 %v722_v2 }
  0x29   :  { %693 = vmatpush3.bf16.msra.mxu0 %v692_v10 }
  0x2a   :  { %695 = vmatprep.subr.bf16.mxu0 %v694_v12 }
  0x2b   :  { %725 = vmatpush3.bf16.msra.mxu1 %v724_v11 }
  0x2c   :  { %727 = vmatprep.subr.bf16.mxu1 %v726_v16 }
  0x2d   :  { %9 = vsyncpa [#allocation5], 0  ;;  %697 = vmatpush3.bf16.msra.mxu0 %v696_v23  ;;  %v700_v35 = vpack.c.bf16 %v86_v27, %v85_v26  ;;  %v732_v36 = vpack.c.bf16 %v118_v30, %v117_v28  ;;  %v702_v37 = vpack.c.bf16 %v104_v32, %v103_v31  ;;  %v87_v38 = vld [vmem:[%s1220_s2 + $0x240] sm:$0xff]  ;;  %v88_v39 = vld [vmem:[%s1220_s2 + $0x248] sm:$0xff]  ;;  %v734_v41 = vpack.c.bf16 %v136_v34, %v135_v33  ;;  %s775_s22 = smov [#allocation4]  }
  0x2e   :  { %699 = vmatprep.subr.bf16.mxu0 %v698_v25  ;;  %v119_v40 = vld [vmem:[%s1220_s2 + $0x340] sm:$0xff]  ;;  %v120_v42 = vld [vmem:[%s1220_s2 + $0x348] sm:$0xff]  ;;  %v105_v43 = vld [vmem:[%s1220_s2 + $0x2d0] sm:$0xff]  ;;  %v704_v47 = vpack.c.bf16 %v88_v39, %v87_v38  ;;  %v164_v16 = vsub.s32 4, %v922_v61  ;;  %v172_v18 = vsub.s32 6, %v922_v61  ;;  %s474_s23 = sshll.u32 %s775_s22, 4  ;;  %s475_s23 = int_to_ptr.vmem [resolvable:$true] %s474_s23 }
  0x2f   :  { %729 = vmatpush3.bf16.msra.mxu1 %v728_v24  ;;  %v106_v44 = vld [vmem:[%s1220_s2 + $0x2d8] sm:$0xff]  ;;  %v137_v45 = vld [vmem:[%s1220_s2 + $0x3d0] sm:$0xff]  ;;  %v736_v48 = vpack.c.bf16 %v120_v42, %v119_v40  ;;  %v107_v55 = vld [vmem:[%s1220_s2 + $0x2e0] sm:$0xff]  ;;  %v144_v24 = vstv %s1218_s0  ;;  %vm466_vm0 = vcmask 253952   ;;  %s751_s0 = scalar_lea.vmem %s475_s23, 16  ;;  %s755_s24 = scalar_lea.vmem %s475_s23, 32 }
  0x30   :  { %731 = vmatprep.subr.bf16.mxu1 %v730_v29  ;;  %v138_v46 = vld [vmem:[%s1220_s2 + $0x3d8] sm:$0xff]  ;;  %v706_v49 = vpack.c.bf16 %v106_v44, %v105_v43  ;;  %v89_v50 = vld [vmem:[%s1220_s2 + $0x250] sm:$0xff]  ;;  %v108_v56 = vld [vmem:[%s1220_s2 + $0x2e8] sm:$0xff]  ;;  %v165_v21 = vrot.slane %v968_v20, %v164_v16  ;;  %v173_v22 = vrot.slane %v968_v20, %v172_v18  ;;  %p752_p0 = scmp.ne.s32.totalorder %s475_s23, %s751_s0  ;;  %p756_p1 = scmp.lt.s32.totalorder %s475_s23, %s475_s23 }
  0x31   :  { %701 = vmatpush3.bf16.msra.mxu0 %v700_v35  ;;  %v90_v51 = vld [vmem:[%s1220_s2 + $0x258] sm:$0xff]  ;;  %v121_v52 = vld [vmem:[%s1220_s2 + $0x350] sm:$0xff]  ;;  %v738_v53 = vpack.c.bf16 %v138_v46, %v137_v45  ;;  %v139_v57 = vld [vmem:[%s1220_s2 + $0x3e0] sm:$0xff]  ;;  %v710_v62 = vpack.c.bf16 %v108_v56, %v107_v55  ;;  %p757_p2 = scmp.lt.s32.totalorder %s755_s24, %s751_s0 }
  0x32   :  { %703 = vmatprep.subr.bf16.mxu0 %v702_v37  ;;  %v122_v54 = vld [vmem:[%s1220_s2 + $0x358] sm:$0xff]  ;;  %v140_v58 = vld [vmem:[%s1220_s2 + $0x3e8] sm:$0xff]  ;;  %v708_v59 = vpack.c.bf16 %v90_v51, %v89_v50  ;;  %v91_v63 = vld [vmem:[%s1220_s2 + $0x260] sm:$0xff] }
  0x33   :  { %733 = vmatpush3.bf16.msra.mxu1 %v732_v36  ;;  %v740_v60 = vpack.c.bf16 %v122_v54, %v121_v52  ;;  %v92_v0 = vld [vmem:[%s1220_s2 + $0x268] sm:$0xff]  ;;  %v123_v1 = vld [vmem:[%s1220_s2 + $0x360] sm:$0xff]  ;;  %v742_v2 = vpack.c.bf16 %v140_v58, %v139_v57  ;;  %v109_v4 = vld [vmem:[%s1220_s2 + $0x2f0] sm:$0xff]  ;;  %p758_p3 = por %p757_p2, %p756_p1 }
  0x34   :  { %735 = vmatprep.subr.bf16.mxu1 %v734_v41  ;;  %v124_v3 = vld [vmem:[%s1220_s2 + $0x368] sm:$0xff]  ;;  %v110_v5 = vld [vmem:[%s1220_s2 + $0x2f8] sm:$0xff]  ;;  %v141_v6 = vld [vmem:[%s1220_s2 + $0x3f0] sm:$0xff]  ;;  %v712_v8 = vpack.c.bf16 %v92_v0, %v91_v63 }
  0x35   :  { %705 = vmatpush3.bf16.msra.mxu0 %v704_v47  ;;  %v142_v7 = vld [vmem:[%s1220_s2 + $0x3f8] sm:$0xff]  ;;  %v744_v9 = vpack.c.bf16 %v124_v3, %v123_v1  ;;  %v714_v10 = vpack.c.bf16 %v110_v5, %v109_v4  ;;  %v93_v11 = vld [vmem:[%s1220_s2 + $0x270] sm:$0xff]  ;;  %p759_p4 = pnand %p758_p3, %p752_p0 }
  0x36   :  { %707 = vmatprep.subr.bf16.mxu0 %v706_v49  ;;  %v94_v12 = vld [vmem:[%s1220_s2 + $0x278] sm:$0xff]  ;;  %v746_v13 = vpack.c.bf16 %v142_v7, %v141_v6  ;;  %v125_v14 = vld [vmem:[%s1220_s2 + $0x370] sm:$0xff] }
  0x37   :  { %737 = vmatpush3.bf16.msra.mxu1 %v736_v48  ;;  %v126_v15 = vld [vmem:[%s1220_s2 + $0x378] sm:$0xff]  ;;  %v716_v17 = vpack.c.bf16 %v94_v12, %v93_v11 }
  0x38   :  { %739 = vmatprep.subr.bf16.mxu1 %v738_v53  ;;  %v748_v19 = vpack.c.bf16 %v126_v15, %v125_v14 }
  0x39   :  { %709 = vmatpush3.bf16.msra.mxu0 %v708_v59 }
  0x3a   :  { %711 = vmatprep.subr.bf16.mxu0 %v710_v62 }
  0x3b   :  { %741 = vmatpush3.bf16.msra.mxu1 %v740_v60 }
  0x3c   :  { %743 = vmatprep.subr.bf16.mxu1 %v742_v2 }
  0x3d   :  { %713 = vmatpush3.bf16.msra.mxu0 %v712_v8 }
  0x3e   :  { %715 = vmatprep.subr.bf16.mxu0 %v714_v10 }
  0x3f   :  { %745 = vmatpush3.bf16.msra.mxu1 %v744_v9 }
  0x40   :  { %747 = vmatprep.subr.bf16.mxu1 %v746_v13 }
  0x41   :  { %717 = vmatpush3.bf16.msra.mxu0 %v716_v17 }
  0x43   :  { %749 = vmatpush3.bf16.msra.mxu1 %v748_v19 }
  0x44   :  { %391 = vmatmul.mubr.f32.vlgmr.msra.gmra.mrb[2].mxu0 %v165_v21 }
  0x46   :  { %461 = vmatmul.mubr.f32.vlgmr.msra.gmra.mrb[2].mxu1 %v173_v22 }
  0xf7   :  { %v514_v23 = vpop.f32.mrb[0].mxu0 }
  0xf8   :  { %v515_v25 = vpop.f32.mrb[1].mxu0 }
  0xf9   :  { %v549_v26 = vpop.f32.mrb[0].mxu1  ;;  %v516_v61 = vadd.f32 %v515_v25, %v514_v23 }
  0xfa   :  { %v550_v27 = vpop.f32.mrb[1].mxu1 }
  0xfb   :  { %v551_v28 = vadd.f32 %v550_v27, %v549_v26  ;;  %v253_v29 = vadd.f32 %v516_v61, %v144_v24 }
  0xfd   :  { %v323_v30 = vadd.f32 %v551_v28, %v253_v29 }
 0x117   :  { %v584_v31 = vpop.f32.mrb[2].mxu0 }
 0x118   :  { %v585_v32 = vpop.f32.mrb[3].mxu0 }
 0x119   :  { %v619_v33 = vpop.f32.mrb[2].mxu1  ;;  %v586_v34 = vadd.f32 %v585_v32, %v584_v31 }
 0x11a   :  { %v620_v20 = vpop.f32.mrb[3].mxu1 }
 0x11b   :  { %v621_v35 = vadd.f32 %v620_v20, %v619_v33  ;;  %v393_v36 = vadd.f32 %v586_v34, %v323_v30 }
 0x11d   :  { %v463_v37 = vadd.f32 %v621_v35, %v393_v36 }
 0x11f   :  { %467 = vst.msk [vmem:[#allocation4] sm:$0x1] %vm466_vm0, %v463_v37 }
 0x120   :  { %762 = shalt.err (!%p759_p4)
}
 0x121   :  { %s763_s27 = scalar_lea.hbm %s1221_s3, 16 }
 0x122   :  { %p764_p5 = scmp.ne.s32.totalorder %s1221_s3, %s763_s27  ;;  %p767_p6 = scmp.lt.u32.totalorder %s763_s27, %s1221_s3 }
 0x124   :  { %p769_p7 = pnand %p767_p6, %p764_p5 }
 0x126   :  { %772 = shalt.err (!%p769_p7)
}
 0x127   :  { %477 = dma.vmem_to_hbm [thread:$0]  %s475_s23, 16, %s1221_s3, [#allocation5]  }
 0x128   :  { %773 = dma.done.wait [#allocation5], 16  }
 0x129   :  { %774 = vsyncadd [#allocation5], 4294967280 }
 0x12a   :  { %481 = vsyncpa [#allocation5], 1 }

</bundles_post_ra>
